<compile_context>
chip_gen: v5e
topology: v5e:2x2
jax: 0.10.0
libtpu: 0.0.40
codegen_flags: <defaults>
</compile_context>

<pallas_src>
import functools

import jax
import jax.numpy as jnp
from jax.experimental import pallas as pl
from jax.experimental.pallas import tpu as pltpu

LN_EPS = 1e-5          # PyTorch nn.LayerNorm default
INV_SQRT2 = 0.7071067811865476


def _round_up(x, m):
    return ((x + m - 1) // m) * m


def residual_block_kernel(x_ref, w1_ref, w2_ref, vecs_ref, o_ref, *, f_valid):
    """One row tile: two fused (LN -> Linear(bf16 MXU) -> GELU -> LayerScale -> +res) blocks."""
    x = x_ref[...].astype(jnp.float32)          # (tm, Fp)
    vecs = vecs_ref[...].astype(jnp.float32)    # (8, Fp) packed vector params
    b1, b2 = vecs[0:1], vecs[1:2]
    g1, bt1 = vecs[2:3], vecs[3:4]
    g2, bt2 = vecs[4:5], vecs[5:6]
    s1, s2 = vecs[6:7], vecs[7:8]

    inv_f = 1.0 / f_valid

    def layernorm(v, g, b):
        # Single-pass statistics over the *valid* features; padded lanes are zero so the
        # sums are exact, and g/b are zero-padded so padded output lanes stay zero.
        mean = jnp.sum(v, axis=-1, keepdims=True) * inv_f
        mean_sq = jnp.sum(v * v, axis=-1, keepdims=True) * inv_f
        var = jnp.maximum(mean_sq - mean * mean, 0.0)
        return (v - mean) * jax.lax.rsqrt(var + LN_EPS) * g + b

    def gelu_exact(v):
        # nn.GELU() default = exact erf-based GELU
        return 0.5 * v * (1.0 + jax.lax.erf(v * INV_SQRT2))

    # --- block 1 ---
    h = layernorm(x, g1, bt1)
    h = jnp.dot(h.astype(jnp.bfloat16), w1_ref[...],
                preferred_element_type=jnp.float32) + b1
    h = gelu_exact(h)
    # dropout: identity in eval mode
    x = x + h * s1

    # --- block 2 ---
    h = layernorm(x, g2, bt2)
    h = jnp.dot(h.astype(jnp.bfloat16), w2_ref[...],
                preferred_element_type=jnp.float32) + b2
    h = gelu_exact(h)
    # dropout: identity in eval mode
    o_ref[...] = (x + h * s2).astype(o_ref.dtype)


@functools.partial(jax.jit, static_argnames=("tm",))
def residual_block_with_layer_scale(x2d, params, tm=256):
    """x2d: (N, F) rows of features. params: dict of f32 parameters (see make_params)."""
    N, F = x2d.shape
    assert tm % 8 == 0, "row tile must be a multiple of 8 (sublane)"
    Fp = _round_up(F, 128)                 # lane-dense feature axis
    tm_eff = min(tm, _round_up(N, 8))      # clamp tile to the batch
    grid = pl.cdiv(N, tm_eff)              # partial final tile handled by Pallas masking

    pad_f = Fp - F
    x_p = jnp.pad(x2d, ((0, 0), (0, pad_f)))
    w1 = jnp.pad(params["w1"], ((0, pad_f), (0, pad_f))).astype(jnp.bfloat16)
    w2 = jnp.pad(params["w2"], ((0, pad_f), (0, pad_f))).astype(jnp.bfloat16)
    vecs = jnp.stack([params["b1"], params["b2"],
                      params["ln1_g"], params["ln1_b"],
                      params["ln2_g"], params["ln2_b"],
                      params["scale1"], params["scale2"]]).astype(jnp.float32)
    vecs = jnp.pad(vecs, ((0, 0), (0, pad_f)))        # (8, Fp)

    # VMEM budget: double-buffered row tiles in/out, resident bf16 weights, packed vectors,
    # plus headroom for f32 intermediates.
    xb = x2d.dtype.itemsize
    est = (2 * tm_eff * Fp * xb          # input (double-buffered)
           + 2 * tm_eff * Fp * xb        # output (double-buffered)
           + 2 * 2 * Fp * Fp * 2         # two bf16 weight matrices (double-buffered)
           + 2 * 8 * Fp * 4              # packed vector params
           + 6 * tm_eff * Fp * 4)        # f32 intermediates headroom
    vmem_limit = int(min(128 * 2**20, max(32 * 2**20, 2 * est)))

    row_spec = pl.BlockSpec((tm_eff, Fp), lambda i: (i, 0))
    mat_spec = pl.BlockSpec((Fp, Fp), lambda i: (0, 0))
    vec_spec = pl.BlockSpec((8, Fp), lambda i: (0, 0))

    out = pl.pallas_call(
        functools.partial(residual_block_kernel, f_valid=float(F)),
        out_shape=jax.ShapeDtypeStruct((N, Fp), x2d.dtype),
        grid_spec=pltpu.PrefetchScalarGridSpec(
            num_scalar_prefetch=0,
            grid=(grid,),
            in_specs=[row_spec, mat_spec, mat_spec, vec_spec],
            out_specs=row_spec,
        ),
        compiler_params=pltpu.CompilerParams(
            dimension_semantics=("parallel",),
            vmem_limit_bytes=vmem_limit,
        ),
    )(x_p, w1, w2, vecs)
    return out[:, :F]


def make_params(key, features, layer_scale_init_value=1e-6, dtype=jnp.float32):
    """Deterministic synthetic init matching the module's parameter shapes."""
    k1, k2, k3, k4, k5, k6, k7, k8 = jax.random.split(key, 8)
    bound = 1.0 / jnp.sqrt(features)
    return {
        # Linear weights stored as (in, out) for the kernel (PyTorch keeps (out, in)).
        "w1": jax.random.uniform(k1, (features, features), dtype, -bound, bound),
        "b1": jax.random.uniform(k2, (features,), dtype, -bound, bound),
        "w2": jax.random.uniform(k3, (features, features), dtype, -bound, bound),
        "b2": jax.random.uniform(k4, (features,), dtype, -bound, bound),
        # randomized affine params to exercise the LN affine path
        "ln1_g": 1.0 + 0.1 * jax.random.normal(k5, (features,), dtype),
        "ln1_b": 0.1 * jax.random.normal(k6, (features,), dtype),
        "ln2_g": 1.0 + 0.1 * jax.random.normal(k7, (features,), dtype),
        "ln2_b": 0.1 * jax.random.normal(k8, (features,), dtype),
        "scale1": jnp.full((features,), layer_scale_init_value, dtype),
        "scale2": jnp.full((features,), layer_scale_init_value, dtype),
    }


def reference(x2d, p):
    """Pure-JAX f32 reference of the PyTorch forward (eval mode)."""
    def ln(v, g, b):
        mu = jnp.mean(v, -1, keepdims=True)
        var = jnp.mean((v - mu) ** 2, -1, keepdims=True)
        return (v - mu) / jnp.sqrt(var + LN_EPS) * g + b

    def gelu(v):
        return 0.5 * v * (1.0 + jax.lax.erf(v * INV_SQRT2))

    res = x2d
    h = gelu(ln(x2d, p["ln1_g"], p["ln1_b"]) @ p["w1"] + p["b1"])
    x = res + h * p["scale1"]
    res = x
    h = gelu(ln(x, p["ln2_g"], p["ln2_b"]) @ p["w2"] + p["b2"])
    return res + h * p["scale2"]


if __name__ == "__main__":
    # Small shapes consistent with the module: batch=2, seq=8, features=32
    # (in_features == out_features is required by the module's residual adds).
    B, S, F = 2, 8, 32
    key = jax.random.PRNGKey(0)
    kx, kp = jax.random.split(key)

    x = jax.random.normal(kx, (B, S, F), jnp.float32)
    x2d = x.reshape(B * S, F)

    # (a) module-default layer_scale (1e-6): tight check against the f32 reference
    #     (the bf16 matmul path is damped by 1e-6, so f32-level agreement is expected).
    p_def = make_params(kp, F, layer_scale_init_value=1e-6)
    out = residual_block_with_layer_scale(x2d, p_def, tm=256)
    jax.block_until_ready(out)
    ref = reference(x2d, p_def)
    assert jnp.allclose(out, ref, atol=1e-4, rtol=1e-4), "mismatch vs f32 reference (scale=1e-6)"

    # (b) larger layer_scale to actually exercise the bf16 MXU path; compare against a
    #     reference that uses the same bf16-rounded weights (mixed-precision check).
    p_big = make_params(kp, F, layer_scale_init_value=0.1)
    out_b = residual_block_with_layer_scale(x2d, p_big, tm=256)
    jax.block_until_ready(out_b)
    p_big_q = dict(p_big)
    p_big_q["w1"] = p_big["w1"].astype(jnp.bfloat16).astype(jnp.float32)
    p_big_q["w2"] = p_big["w2"].astype(jnp.bfloat16).astype(jnp.float32)
    ref_b = reference(x2d, p_big_q)
    assert jnp.allclose(out_b, ref_b, atol=2e-2, rtol=2e-2), "mismatch vs reference (scale=0.1)"

    out3d = out.reshape(B, S, F)
    jax.block_until_ready(out3d)
    print("KERNEL_OK")
</pallas_src>

<mosaic_0001>
module attributes {stable_mosaic.version = 11 : i64} {
  func.func @residual_block_kernel(%arg0: i32, %arg1: memref<16x128xf32, #tpu.memory_space<vmem>>, %arg2: memref<128x128xbf16, #tpu.memory_space<vmem>>, %arg3: memref<128x128xbf16, #tpu.memory_space<vmem>>, %arg4: memref<8x128xf32, #tpu.memory_space<vmem>>, %arg5: memref<16x128xf32, #tpu.memory_space<vmem>>) attributes {dimension_semantics = [#tpu.dimension_semantics<parallel>], iteration_bounds = array<i64: 1>, scalar_prefetch = 0 : i64, scratch_operands = 0 : i64, tpu.core_type = #tpu.core_type<tc>, window_params = [{transform_indices = @transform_0, window_bounds = array<i64: 16, 128>}, {pipeline_mode = #tpu.pipeline_mode<synchronous>, transform_indices = @transform_1, window_bounds = array<i64: 128, 128>}, {pipeline_mode = #tpu.pipeline_mode<synchronous>, transform_indices = @transform_2, window_bounds = array<i64: 128, 128>}, {pipeline_mode = #tpu.pipeline_mode<synchronous>, transform_indices = @transform_3, window_bounds = array<i64: 8, 128>}, {transform_indices = @transform_4, window_bounds = array<i64: 16, 128>}]} {
    %c0 = arith.constant 0 : index
    %c0_0 = arith.constant 0 : index
    %0 = vector.load %arg1[%c0, %c0_0] : memref<16x128xf32, #tpu.memory_space<vmem>>, vector<16x128xf32>
    %c0_1 = arith.constant 0 : index
    %c0_2 = arith.constant 0 : index
    %1 = vector.load %arg4[%c0_1, %c0_2] : memref<8x128xf32, #tpu.memory_space<vmem>>, vector<8x128xf32>
    %2 = vector.extract_strided_slice %1 {offsets = [0, 0], sizes = [1, 128], strides = [1, 1]} : vector<8x128xf32> to vector<1x128xf32>
    %3 = vector.extract_strided_slice %1 {offsets = [1, 0], sizes = [1, 128], strides = [1, 1]} : vector<8x128xf32> to vector<1x128xf32>
    %4 = vector.extract_strided_slice %1 {offsets = [2, 0], sizes = [1, 128], strides = [1, 1]} : vector<8x128xf32> to vector<1x128xf32>
    %5 = vector.extract_strided_slice %1 {offsets = [3, 0], sizes = [1, 128], strides = [1, 1]} : vector<8x128xf32> to vector<1x128xf32>
    %6 = vector.extract_strided_slice %1 {offsets = [4, 0], sizes = [1, 128], strides = [1, 1]} : vector<8x128xf32> to vector<1x128xf32>
    %7 = vector.extract_strided_slice %1 {offsets = [5, 0], sizes = [1, 128], strides = [1, 1]} : vector<8x128xf32> to vector<1x128xf32>
    %8 = vector.extract_strided_slice %1 {offsets = [6, 0], sizes = [1, 128], strides = [1, 1]} : vector<8x128xf32> to vector<1x128xf32>
    %9 = vector.extract_strided_slice %1 {offsets = [7, 0], sizes = [1, 128], strides = [1, 1]} : vector<8x128xf32> to vector<1x128xf32>
    %cst = arith.constant dense<0.000000e+00> : vector<16xf32>
    %10 = vector.multi_reduction <add>, %0, %cst [1] : vector<16x128xf32> to vector<16xf32>
    %11 = vector.shape_cast %10 : vector<16xf32> to vector<16x1xf32>
    %cst_3 = arith.constant 3.125000e-02 : f32
    %12 = vector.broadcast %cst_3 : f32 to vector<16x1xf32>
    %13 = arith.mulf %11, %12 : vector<16x1xf32>
    %14 = arith.mulf %0, %0 : vector<16x128xf32>
    %cst_4 = arith.constant dense<0.000000e+00> : vector<16xf32>
    %15 = vector.multi_reduction <add>, %14, %cst_4 [1] : vector<16x128xf32> to vector<16xf32>
    %16 = vector.shape_cast %15 : vector<16xf32> to vector<16x1xf32>
    %cst_5 = arith.constant 3.125000e-02 : f32
    %17 = vector.broadcast %cst_5 : f32 to vector<16x1xf32>
    %18 = arith.mulf %16, %17 : vector<16x1xf32>
    %19 = arith.mulf %13, %13 : vector<16x1xf32>
    %20 = arith.subf %18, %19 : vector<16x1xf32>
    %cst_6 = arith.constant 0.000000e+00 : f32
    %21 = vector.broadcast %cst_6 : f32 to vector<16x1xf32>
    %22 = arith.maximumf %20, %21 : vector<16x1xf32>
    %23 = vector.broadcast %13 : vector<16x1xf32> to vector<16x128xf32>
    %24 = arith.subf %0, %23 : vector<16x128xf32>
    %cst_7 = arith.constant 9.99999974E-6 : f32
    %25 = vector.broadcast %cst_7 : f32 to vector<16x1xf32>
    %26 = arith.addf %22, %25 : vector<16x1xf32>
    %27 = math.rsqrt %26 : vector<16x1xf32>
    %28 = vector.broadcast %27 : vector<16x1xf32> to vector<16x128xf32>
    %29 = arith.mulf %24, %28 : vector<16x128xf32>
    %30 = vector.broadcast %4 : vector<1x128xf32> to vector<16x128xf32>
    %31 = arith.mulf %29, %30 : vector<16x128xf32>
    %32 = vector.broadcast %5 : vector<1x128xf32> to vector<16x128xf32>
    %33 = arith.addf %31, %32 : vector<16x128xf32>
    %34 = arith.truncf %33 : vector<16x128xf32> to vector<16x128xbf16>
    %c0_8 = arith.constant 0 : index
    %c0_9 = arith.constant 0 : index
    %35 = vector.load %arg2[%c0_8, %c0_9] : memref<128x128xbf16, #tpu.memory_space<vmem>>, vector<128x128xbf16>
    %cst_10 = arith.constant dense<0.000000e+00> : vector<16x128xf32>
    %36 = tpu.matmul %34, %35, %cst_10 {dimension_numbers = #tpu.dot_dimension_numbers<[1], [0], [0], [1], [0, 0, 1, 1], [], []>} : vector<16x128xbf16>, vector<128x128xbf16>, vector<16x128xf32> -> vector<16x128xf32>
    %37 = vector.broadcast %2 : vector<1x128xf32> to vector<16x128xf32>
    %38 = arith.addf %36, %37 : vector<16x128xf32>
    %cst_11 = arith.constant 5.000000e-01 : f32
    %39 = vector.broadcast %cst_11 : f32 to vector<16x128xf32>
    %40 = arith.mulf %39, %38 : vector<16x128xf32>
    %cst_12 = arith.constant 0.707106769 : f32
    %41 = vector.broadcast %cst_12 : f32 to vector<16x128xf32>
    %42 = arith.mulf %38, %41 : vector<16x128xf32>
    %43 = math.erf %42 : vector<16x128xf32>
    %cst_13 = arith.constant 1.000000e+00 : f32
    %44 = vector.broadcast %cst_13 : f32 to vector<16x128xf32>
    %45 = arith.addf %44, %43 : vector<16x128xf32>
    %46 = arith.mulf %40, %45 : vector<16x128xf32>
    %47 = vector.broadcast %8 : vector<1x128xf32> to vector<16x128xf32>
    %48 = arith.mulf %46, %47 : vector<16x128xf32>
    %49 = arith.addf %0, %48 : vector<16x128xf32>
    %cst_14 = arith.constant dense<0.000000e+00> : vector<16xf32>
    %50 = vector.multi_reduction <add>, %49, %cst_14 [1] : vector<16x128xf32> to vector<16xf32>
    %51 = vector.shape_cast %50 : vector<16xf32> to vector<16x1xf32>
    %cst_15 = arith.constant 3.125000e-02 : f32
    %52 = vector.broadcast %cst_15 : f32 to vector<16x1xf32>
    %53 = arith.mulf %51, %52 : vector<16x1xf32>
    %54 = arith.mulf %49, %49 : vector<16x128xf32>
    %cst_16 = arith.constant dense<0.000000e+00> : vector<16xf32>
    %55 = vector.multi_reduction <add>, %54, %cst_16 [1] : vector<16x128xf32> to vector<16xf32>
    %56 = vector.shape_cast %55 : vector<16xf32> to vector<16x1xf32>
    %cst_17 = arith.constant 3.125000e-02 : f32
    %57 = vector.broadcast %cst_17 : f32 to vector<16x1xf32>
    %58 = arith.mulf %56, %57 : vector<16x1xf32>
    %59 = arith.mulf %53, %53 : vector<16x1xf32>
    %60 = arith.subf %58, %59 : vector<16x1xf32>
    %cst_18 = arith.constant 0.000000e+00 : f32
    %61 = vector.broadcast %cst_18 : f32 to vector<16x1xf32>
    %62 = arith.maximumf %60, %61 : vector<16x1xf32>
    %63 = vector.broadcast %53 : vector<16x1xf32> to vector<16x128xf32>
    %64 = arith.subf %49, %63 : vector<16x128xf32>
    %cst_19 = arith.constant 9.99999974E-6 : f32
    %65 = vector.broadcast %cst_19 : f32 to vector<16x1xf32>
    %66 = arith.addf %62, %65 : vector<16x1xf32>
    %67 = math.rsqrt %66 : vector<16x1xf32>
    %68 = vector.broadcast %67 : vector<16x1xf32> to vector<16x128xf32>
    %69 = arith.mulf %64, %68 : vector<16x128xf32>
    %70 = vector.broadcast %6 : vector<1x128xf32> to vector<16x128xf32>
    %71 = arith.mulf %69, %70 : vector<16x128xf32>
    %72 = vector.broadcast %7 : vector<1x128xf32> to vector<16x128xf32>
    %73 = arith.addf %71, %72 : vector<16x128xf32>
    %74 = arith.truncf %73 : vector<16x128xf32> to vector<16x128xbf16>
    %c0_20 = arith.constant 0 : index
    %c0_21 = arith.constant 0 : index
    %75 = vector.load %arg3[%c0_20, %c0_21] : memref<128x128xbf16, #tpu.memory_space<vmem>>, vector<128x128xbf16>
    %cst_22 = arith.constant dense<0.000000e+00> : vector<16x128xf32>
    %76 = tpu.matmul %74, %75, %cst_22 {dimension_numbers = #tpu.dot_dimension_numbers<[1], [0], [0], [1], [0, 0, 1, 1], [], []>} : vector<16x128xbf16>, vector<128x128xbf16>, vector<16x128xf32> -> vector<16x128xf32>
    %77 = vector.broadcast %3 : vector<1x128xf32> to vector<16x128xf32>
    %78 = arith.addf %76, %77 : vector<16x128xf32>
    %cst_23 = arith.constant 5.000000e-01 : f32
    %79 = vector.broadcast %cst_23 : f32 to vector<16x128xf32>
    %80 = arith.mulf %79, %78 : vector<16x128xf32>
    %cst_24 = arith.constant 0.707106769 : f32
    %81 = vector.broadcast %cst_24 : f32 to vector<16x128xf32>
    %82 = arith.mulf %78, %81 : vector<16x128xf32>
    %83 = math.erf %82 : vector<16x128xf32>
    %cst_25 = arith.constant 1.000000e+00 : f32
    %84 = vector.broadcast %cst_25 : f32 to vector<16x128xf32>
    %85 = arith.addf %84, %83 : vector<16x128xf32>
    %86 = arith.mulf %80, %85 : vector<16x128xf32>
    %87 = vector.broadcast %9 : vector<1x128xf32> to vector<16x128xf32>
    %88 = arith.mulf %86, %87 : vector<16x128xf32>
    %89 = arith.addf %49, %88 : vector<16x128xf32>
    %c0_26 = arith.constant 0 : index
    %c0_27 = arith.constant 0 : index
    %90 = vector.load %arg5[%c0_26, %c0_27] : memref<16x128xf32, #tpu.memory_space<vmem>>, vector<16x128xf32>
    tpu.vector_store %arg5[%c0_26, %c0_27], %89 {strides = array<i32>} : memref<16x128xf32, #tpu.memory_space<vmem>>, vector<16x128xf32>,
    return
  }
  func.func @transform_0(%arg0: i32) -> (i32, i32) {
    %c0_i32 = arith.constant 0 : i32
    %c0_i32_0 = arith.constant 0 : i32
    return %arg0, %c0_i32 : i32, i32
  }
  func.func @transform_1(%arg0: i32) -> (i32, i32) {
    %c0_i32 = arith.constant 0 : i32
    %c0_i32_0 = arith.constant 0 : i32
    %c0_i32_1 = arith.constant 0 : i32
    return %c0_i32, %c0_i32_0 : i32, i32
  }
  func.func @transform_2(%arg0: i32) -> (i32, i32) {
    %c0_i32 = arith.constant 0 : i32
    %c0_i32_0 = arith.constant 0 : i32
    %c0_i32_1 = arith.constant 0 : i32
    return %c0_i32, %c0_i32_0 : i32, i32
  }
  func.func @transform_3(%arg0: i32) -> (i32, i32) {
    %c0_i32 = arith.constant 0 : i32
    %c0_i32_0 = arith.constant 0 : i32
    %c0_i32_1 = arith.constant 0 : i32
    return %c0_i32, %c0_i32_0 : i32, i32
  }
  func.func @transform_4(%arg0: i32) -> (i32, i32) {
    %c0_i32 = arith.constant 0 : i32
    %c0_i32_0 = arith.constant 0 : i32
    return %arg0, %c0_i32 : i32, i32
  }
}

</mosaic_0001>

<bundles_post_ra>
// kernel: residual_block_with_layer_scale.1
= control target key start
LH: loop header
LB: loop body
LE: loop exit
PB: predicated region body
PF: predicated region fallthrough
CT: control target
= control target key end

     0   :  { %s772_s0 = inlined_call_operand.vmem [shape: f32[16,128], index: 0, kind: input, shape index: {}]   ;;  %s773_s1 = inlined_call_operand.vmem [shape: bf16[128,128], index: 1, kind: input, shape index: {}]   ;;  %s774_s2 = inlined_call_operand.vmem [shape: bf16[128,128], index: 2, kind: input, shape index: {}]   ;;  %s775_s3 = inlined_call_operand.vmem [shape: f32[8,128], index: 3, kind: input, shape index: {}]   ;;  %s776_s4 = inlined_call_operand.hbm [shape: f32[16,128], index: 4, kind: output, shape index: {}]  }
   0x1   :  { %v651_v0 = vld [vmem:[%s772_s0] sm:$0xff] }
   0x2   :  { %9 = vsyncpa [#allocation3], 0  ;;  %21 = vadd.xlane.f32.xlu0 %v651_v0  ;;  %v27_v1 = vmul.f32 %v651_v0, %v651_v0  ;;  %v659_v2 = vld [vmem:[%s772_s0 + $0x8] sm:$0xff]  ;;  %v566_v4 = vld [vmem:[%s773_s1 + $0x38] sm:$0xff]  ;;  %s479_s26 = sshll.u32 %s776_s4, 4  ;;  %s621_s27 = smov 128   ;;  %s480_s26 = int_to_ptr.hbm [resolvable:$true] %s479_s26 }
   0x3   :  { %v28_v3 = vmul.f32 %v659_v2, %v659_v2  ;;  %139 = vmatpush.bf16.msra.mxu0 %v566_v4  ;;  %v565_v5 = vld [vmem:[%s773_s1 + $0x30] sm:$0xff]  ;;  %v564_v6 = vld [vmem:[%s773_s1 + $0x28] sm:$0xff]  ;;  %v563_v7 = vld [vmem:[%s773_s1 + $0x20] sm:$0xff]  ;;  %s622_s28 = smov 8  }
   0x4   :  { %29 = vadd.xlane.f32.xlu1 %v27_v1  ;;  %v562_v8 = vld [vmem:[%s773_s1 + $0x18] sm:$0xff]  ;;  %v561_v11 = vld [vmem:[%s773_s1 + $0x10] sm:$0xff]  ;;  %v560_v15 = vld [vmem:[%s773_s1 + $0x8] sm:$0xff] }
   0x5   :  { %v559_v18 = vld [vmem:[%s773_s1] sm:$0xff] }
   0x6   :  { %v691_v38 = vld [vmem:[%s775_s3] sm:$0xff] }
   0x7   :  { %140 = vmatpush.bf16.msra.mxu0 %v565_v5  ;;  %v67_v43 = vperm.slane %v691_v38, 2  ;;  %v70_v49 = vperm.slane %v691_v38, 3  ;;  %v90_v54 = vperm.slane %v691_v38, 0 }
   0xa   :  { %23 = vadd.xlane.f32.xlu0 %v659_v2 }
   0xb   :  { %141 = vmatpush.bf16.msra.mxu0 %v564_v6 }
   0xc   :  { %31 = vadd.xlane.f32.xlu1 %v28_v3 }
   0xf   :  { %142 = vmatpush.bf16.msra.mxu0 %v563_v7 }
  0x13   :  { %143 = vmatpush.bf16.msra.mxu0 %v562_v8 }
  0x17   :  { %144 = vmatpush.bf16.msra.mxu0 %v561_v11 }
  0x1b   :  { %145 = vmatpush.bf16.msra.mxu0 %v560_v15 }
  0x1f   :  { %146 = vmatpush.bf16.msra.mxu0 %v559_v18 }
  0x75   :  { %v22_v9 = vpop.xlane.xlu0 %21 }
  0x76   :  { %v25_v10 = vmul.f32 0.03125, %v22_v9 }
  0x77   :  { %v30_v12 = vpop.xlane.xlu1 %29 }
  0x78   :  { %v35_v13 = vmul.f32 %v25_v10, %v25_v10  ;;  %v33_v14 = vmul.f32 0.03125, %v30_v12  ;;  %v41_v40 = vsub.f32 %v651_v0, %v25_v10 }
  0x7a   :  { %v37_v16 = vsub.f32 %v33_v14, %v35_v13 }
  0x7c   :  { %v39_v17 = vmax.f32 %v37_v16, 0.0 }
  0x7d   :  { %v24_v19 = vpop.xlane.xlu0 %23 }
  0x7e   :  { %v43_v20 = vadd.f32 1e-05, %v39_v17  ;;  %v26_v21 = vmul.f32 0.03125, %v24_v19 }
  0x7f   :  { %v32_v22 = vpop.xlane.xlu1 %31 }
  0x80   :  { %578 = vrsqrt.f32 %v43_v20  ;;  %v36_v23 = vmul.f32 %v26_v21, %v26_v21  ;;  %v34_v24 = vmul.f32 0.03125, %v32_v22  ;;  %vm51_vm1 = vweird.f32 %v43_v20 }
  0x81   :  { %v42_v45 = vsub.f32 %v659_v2, %v26_v21 }
  0x82   :  { %v38_v25 = vsub.f32 %v34_v24, %v36_v23 }
  0x84   :  { %v40_v26 = vmax.f32 %v38_v25, 0.0 }
  0x86   :  { %v579_v27 = vpop.eup %578  ;;  %v44_v29 = vadd.f32 1e-05, %v40_v26 }
  0x87   :  { %v46_v28 = vmul.f32 %v579_v27, %v43_v20  ;;  %vm52_vm0 = vweird.f32 %v579_v27 }
  0x88   :  { %580 = vrsqrt.f32 %v44_v29  ;;  %vm53_vm2 = vmor %vm51_vm1, %vm52_vm0  ;;  %vm61_vm4 = vweird.f32 %v44_v29 }
  0x89   :  { %v47_v30 = vmul.f32 %v579_v27, %v46_v28 }
  0x8b   :  { %v48_v31 = vmul.f32 0.5, %v47_v30 }
  0x8d   :  { %v49_v32 = vsub.f32 1.5, %v48_v31 }
  0x8e   :  { %v581_v33 = vpop.eup %580 }
  0x8f   :  { %v56_v34 = vmul.f32 %v581_v33, %v44_v29  ;;  %v50_v35 = vmul.f32 %v579_v27, %v49_v32  ;;  %vm62_vm3 = vweird.f32 %v581_v33 }
  0x90   :  { %vm63_vm5 = vmor %vm61_vm4, %vm62_vm3 }
  0x91   :  { %v57_v36 = vmul.f32 %v581_v33, %v56_v34  ;;  %v54_v39 = vsel %vm53_vm2, %v579_v27, %v50_v35 }
  0x92   :  { %v65_v42 = vmul.f32 %v54_v39, %v41_v40 }
  0x93   :  { %v58_v37 = vmul.f32 0.5, %v57_v36 }
  0x94   :  { %v68_v48 = vmul.f32 %v67_v43, %v65_v42 }
  0x95   :  { %v59_v41 = vsub.f32 1.5, %v58_v37 }
  0x96   :  { %v71_v51 = vadd.f32 %v70_v49, %v68_v48 }
  0x97   :  { %v60_v44 = vmul.f32 %v581_v33, %v59_v41 }
  0x99   :  { %v64_v46 = vsel %vm63_vm5, %v581_v33, %v60_v44 }
  0x9a   :  { %v66_v47 = vmul.f32 %v64_v46, %v42_v45 }
  0x9c   :  { %v69_v50 = vmul.f32 %v67_v43, %v66_v47 }
  0x9e   :  { %v72_v52 = vadd.f32 %v70_v49, %v69_v50 }
  0xa0   :  { %v73_v53 = vpack.c.bf16 %v72_v52, %v71_v51 }
  0xa2   :  { %147 = vmatmul.bf16.vlgmr.msra.gmra.mxu0 %v73_v53 }
 0x11f   :  { %v148_v55 = vpop.f32.mrf.mxu0 }
 0x120   :  { %v698_v56 = vadd.f32 %v148_v55, %v90_v54 }
 0x122   :  { %v155_v57 = vmul.f32 0.70710677, %v698_v56 }
 0x124   :  { %v157_v58 = vmul.f32 %v155_v57, %v155_v57 }
 0x126   :  { %v158_v59 = vmin.f32 %v157_v58, 16.0 }
 0x127   :  { %v150_v60 = vpop.f32.mrf.mxu0 }
 0x128   :  { %v159_v61 = vmul.f32 2.1237322e-06, %v158_v59  ;;  %v170_v62 = vmul.f32 3.8918573e-05, %v158_v59  ;;  %v701_v63 = vadd.f32 %v150_v60, %v90_v54 }
 0x12a   :  { %v160_v1 = vadd.f32 0.00028619796, %v159_v61  ;;  %v171_v3 = vadd.f32 0.001143296, %v170_v62  ;;  %v704_v4 = vmul.f32 0.70710677, %v701_v63 }
 0x12c   :  { %v161_v5 = vmul.f32 %v160_v1, %v158_v59  ;;  %v172_v6 = vmul.f32 %v171_v3, %v158_v59  ;;  %v197_v7 = vmul.f32 %v704_v4, %v704_v4 }
 0x12e   :  { %v173_v8 = vadd.f32 0.014752088, %v172_v6  ;;  %v162_v9 = vadd.f32 0.0036580483, %v161_v5  ;;  %v198_v10 = vmin.f32 %v197_v7, 16.0  ;;  %v153_v5 = vmul.f32 0.5, %v698_v56 }
 0x12f   :  { %v241_v7 = vperm.slane %v691_v38, 6 }
 0x130   :  { %v174_v11 = vmul.f32 %v173_v8, %v158_v59  ;;  %v199_v12 = vmul.f32 2.1237322e-06, %v198_v10  ;;  %v210_v13 = vmul.f32 3.8918573e-05, %v198_v10  ;;  %v163_v15 = vmul.f32 %v162_v9, %v158_v59 }
 0x132   :  { %v175_v14 = vadd.f32 0.112945676, %v174_v11  ;;  %v200_v16 = vadd.f32 0.00028619796, %v199_v12  ;;  %v211_v17 = vadd.f32 0.001143296, %v210_v13 }
 0x133   :  { %v164_v22 = vadd.f32 0.05243302, %v163_v15 }
 0x134   :  { %v176_v18 = vmul.f32 %v175_v14, %v158_v59  ;;  %v201_v19 = vmul.f32 %v200_v16, %v198_v10  ;;  %v212_v20 = vmul.f32 %v211_v17, %v198_v10  ;;  %v154_v17 = vmul.f32 0.5, %v701_v63  ;;  %v573_v63 = vld [vmem:[%s774_s2 + $0x30] sm:$0xff] }
 0x135   :  { %v165_v28 = vmul.f32 %v164_v22, %v158_v59  ;;  %v571_v22 = vld [vmem:[%s774_s2 + $0x20] sm:$0xff] }
 0x136   :  { %v177_v21 = vadd.f32 0.4994258, %v176_v18  ;;  %v213_v23 = vadd.f32 0.014752088, %v212_v20  ;;  %v202_v25 = vadd.f32 0.0036580483, %v201_v19 }
 0x137   :  { %v166_v32 = vadd.f32 0.18741608, %v165_v28 }
 0x138   :  { %v178_v24 = vmul.f32 %v177_v21, %v158_v59  ;;  %v214_v26 = vmul.f32 %v213_v23, %v198_v10  ;;  %v203_v30 = vmul.f32 %v202_v25, %v198_v10  ;;  %v574_v21 = vld [vmem:[%s774_s2 + $0x38] sm:$0xff] }
 0x139   :  { %v167_v37 = vmul.f32 %v166_v32, %v158_v59  ;;  %364 = vmatpush.bf16.msra.mxu1 %v574_v21  ;;  %v570_v23 = vld [vmem:[%s774_s2 + $0x18] sm:$0xff] }
 0x13a   :  { %v179_v27 = vadd.f32 1.0, %v178_v24  ;;  %v215_v29 = vadd.f32 0.112945676, %v214_v26  ;;  %v204_v34 = vadd.f32 0.05243302, %v203_v30  ;;  %v568_v30 = vld [vmem:[%s774_s2 + $0x8] sm:$0xff] }
 0x13b   :  { %v168_v44 = vadd.f32 1.1283791, %v167_v37 }
 0x13c   :  { %582 = vrcp.f32 %v179_v27  ;;  %v216_v31 = vmul.f32 %v215_v29, %v198_v10  ;;  %v205_v41 = vmul.f32 %v204_v34, %v198_v10  ;;  %v191_v43 = vand.u32 2147483648, %v179_v27 }
 0x13d   :  { %v189_v46 = vand.u32 2147483647, %v179_v27  ;;  %vm185_vm7 = vweird.f32 %v179_v27  ;;  %v169_v51 = vmul.f32 %v168_v44, %v155_v57  ;;  %365 = vmatpush.bf16.msra.mxu1 %v573_v63 }
 0x13e   :  { %v217_v33 = vadd.f32 0.4994258, %v216_v31  ;;  %v206_v47 = vadd.f32 0.18741608, %v205_v41  ;;  %v192_v49 = vor.u32 1.1754944e-38, %v191_v43 }
 0x13f   :  { %vm190_vm9 = vcmp.eq.f32.partialorder %v189_v46, 8.507059e+37 }
 0x140   :  { %v218_v35 = vmul.f32 %v217_v33, %v198_v10  ;;  %v207_v54 = vmul.f32 %v206_v47, %v198_v10  ;;  %v567_v33 = vld [vmem:[%s774_s2] sm:$0xff] }
 0x142   :  { %v583_v36 = vpop.eup %582  ;;  %v219_v40 = vadd.f32 1.0, %v218_v35  ;;  %v208_v62 = vadd.f32 1.1283791, %v207_v54 }
 0x143   :  { %v181_v39 = vmul.f32 %v583_v36, %v179_v27  ;;  %vm186_vm6 = vweird.f32 %v583_v36  ;;  %v569_v27 = vld [vmem:[%s774_s2 + $0x10] sm:$0xff] }
 0x144   :  { %584 = vrcp.f32 %v219_v40  ;;  %vm187_vm8 = vmor %vm185_vm7, %vm186_vm6  ;;  %v231_v61 = vand.u32 2147483648, %v219_v40  ;;  %v229_v3 = vand.u32 2147483647, %v219_v40  ;;  %vm225_vm11 = vweird.f32 %v219_v40 }
 0x145   :  { %v182_v42 = vsub.f32 1.0, %v181_v39  ;;  %v209_v10 = vmul.f32 %v208_v62, %v704_v4 }
 0x146   :  { %v232_v9 = vor.u32 1.1754944e-38, %v231_v61  ;;  %vm230_vm13 = vcmp.eq.f32.partialorder %v229_v3, 8.507059e+37 }
 0x147   :  { %v183_v45 = vmul.f32 %v583_v36, %v182_v42 }
 0x149   :  { %v184_v48 = vadd.f32 %v583_v36, %v183_v45 }
 0x14a   :  { %v585_v50 = vpop.eup %584 }
 0x14b   :  { %v188_v52 = vsel %vm187_vm8, %v583_v36, %v184_v48  ;;  %v221_v55 = vmul.f32 %v585_v50, %v219_v40  ;;  %vm226_vm10 = vweird.f32 %v585_v50 }
 0x14c   :  { %v193_v53 = vsel %vm190_vm9, %v192_v49, %v188_v52  ;;  %vm227_vm12 = vmor %vm225_vm11, %vm226_vm10 }
 0x14d   :  { %v194_v58 = vmul.f32 %v193_v53, %v169_v51  ;;  %v222_v59 = vsub.f32 1.0, %v221_v55 }
 0x14f   :  { %v523_v60 = vclamps-f32 %v194_v58, 1.0  ;;  %v223_v1 = vmul.f32 %v585_v50, %v222_v59 }
 0x151   :  { %v237_v6 = vadd.f32 1.0, %v523_v60  ;;  %v224_v8 = vadd.f32 %v585_v50, %v223_v1  ;;  %v292_v60 = vperm.slane %v691_v38, 4 }
 0x153   :  { %v239_v57 = vmul.f32 %v237_v6, %v153_v5  ;;  %v228_v11 = vsel %vm227_vm12, %v585_v50, %v224_v8  ;;  %v295_v6 = vperm.slane %v691_v38, 5 }
 0x154   :  { %v233_v13 = vsel %vm230_vm13, %v232_v9, %v228_v11 }
 0x155   :  { %v242_v12 = vmul.f32 %v241_v7, %v239_v57  ;;  %v234_v14 = vmul.f32 %v233_v13, %v209_v10  ;;  %v315_v10 = vperm.slane %v691_v38, 1 }
 0x157   :  { %v712_v15 = vadd.f32 %v242_v12, %v651_v0  ;;  %v524_v16 = vclamps-f32 %v234_v14, 1.0 }
 0x159   :  { %246 = vadd.xlane.f32.xlu2 %v712_v15  ;;  %v252_v56 = vmul.f32 %v712_v15, %v712_v15  ;;  %v238_v18 = vadd.f32 1.0, %v524_v16 }
 0x15b   :  { %254 = vadd.xlane.f32.xlu0 %v252_v56  ;;  %v240_v19 = vmul.f32 %v238_v18, %v154_v17 }
 0x15d   :  { %v243_v4 = vmul.f32 %v241_v7, %v240_v19 }
 0x15f   :  { %v719_v20 = vadd.f32 %v243_v4, %v659_v2  ;;  %v572_v2 = vld [vmem:[%s774_s2 + $0x28] sm:$0xff]  ;;  %s620_s2 = smov [#allocation2]  }
 0x160   :  { %366 = vmatpush.bf16.msra.mxu1 %v572_v2  ;;  %s477_s24 = sshll.u32 %s620_s2, 4  ;;  %s478_s24 = int_to_ptr.vmem [resolvable:$true] %s477_s24 }
 0x161   :  { %248 = vadd.xlane.f32.xlu2 %v719_v20  ;;  %v253_v0 = vmul.f32 %v719_v20, %v719_v20 }
 0x163   :  { %256 = vadd.xlane.f32.xlu1 %v253_v0 }
 0x164   :  { %367 = vmatpush.bf16.msra.mxu1 %v571_v22 }
 0x168   :  { %368 = vmatpush.bf16.msra.mxu1 %v570_v23 }
 0x16c   :  { %369 = vmatpush.bf16.msra.mxu1 %v569_v27 }
 0x170   :  { %370 = vmatpush.bf16.msra.mxu1 %v568_v30 }
 0x174   :  { %371 = vmatpush.bf16.msra.mxu1 %v567_v33 }
 0x1cc   :  { %v247_v24 = vpop.xlane.xlu2 %246 }
 0x1cd   :  { %v250_v25 = vmul.f32 0.03125, %v247_v24 }
 0x1ce   :  { %v255_v26 = vpop.xlane.xlu0 %254 }
 0x1cf   :  { %v260_v28 = vmul.f32 %v250_v25, %v250_v25  ;;  %v258_v29 = vmul.f32 0.03125, %v255_v26  ;;  %v266_v55 = vsub.f32 %v712_v15, %v250_v25 }
 0x1d1   :  { %v262_v31 = vsub.f32 %v258_v29, %v260_v28 }
 0x1d3   :  { %v264_v32 = vmax.f32 %v262_v31, 0.0 }
 0x1d4   :  { %v249_v35 = vpop.xlane.xlu2 %248 }
 0x1d5   :  { %v268_v34 = vadd.f32 1e-05, %v264_v32  ;;  %v251_v36 = vmul.f32 0.03125, %v249_v35 }
 0x1d6   :  { %v257_v37 = vpop.xlane.xlu1 %256 }
 0x1d7   :  { %586 = vrsqrt.f32 %v268_v34  ;;  %v261_v39 = vmul.f32 %v251_v36, %v251_v36  ;;  %v259_v40 = vmul.f32 0.03125, %v257_v37  ;;  %vm276_vm15 = vweird.f32 %v268_v34 }
 0x1d8   :  { %v267_v62 = vsub.f32 %v719_v20, %v251_v36 }
 0x1d9   :  { %v263_v41 = vsub.f32 %v259_v40, %v261_v39 }
 0x1db   :  { %v265_v42 = vmax.f32 %v263_v41, 0.0 }
 0x1dd   :  { %v587_v43 = vpop.eup %586  ;;  %v269_v45 = vadd.f32 1e-05, %v265_v42 }
 0x1de   :  { %v271_v44 = vmul.f32 %v587_v43, %v268_v34  ;;  %vm277_vm14 = vweird.f32 %v587_v43 }
 0x1df   :  { %588 = vrsqrt.f32 %v269_v45  ;;  %vm278_vm0 = vmor %vm276_vm15, %vm277_vm14  ;;  %vm286_vm2 = vweird.f32 %v269_v45 }
 0x1e0   :  { %v272_v46 = vmul.f32 %v587_v43, %v271_v44 }
 0x1e2   :  { %v273_v47 = vmul.f32 0.5, %v272_v46 }
 0x1e4   :  { %v274_v48 = vsub.f32 1.5, %v273_v47 }
 0x1e5   :  { %v589_v49 = vpop.eup %588 }
 0x1e6   :  { %v275_v50 = vmul.f32 %v587_v43, %v274_v48  ;;  %v281_v51 = vmul.f32 %v589_v49, %v269_v45  ;;  %vm287_vm1 = vweird.f32 %v589_v49 }
 0x1e7   :  { %vm288_vm3 = vmor %vm286_vm2, %vm287_vm1 }
 0x1e8   :  { %v282_v52 = vmul.f32 %v589_v49, %v281_v51  ;;  %v279_v54 = vsel %vm278_vm0, %v587_v43, %v275_v50 }
 0x1e9   :  { %v290_v59 = vmul.f32 %v279_v54, %v266_v55 }
 0x1ea   :  { %v283_v53 = vmul.f32 0.5, %v282_v52 }
 0x1eb   :  { %v293_v5 = vmul.f32 %v292_v60, %v290_v59 }
 0x1ec   :  { %v284_v58 = vsub.f32 1.5, %v283_v53 }
 0x1ed   :  { %v296_v8 = vadd.f32 %v295_v6, %v293_v5 }
 0x1ee   :  { %v285_v61 = vmul.f32 %v589_v49, %v284_v58 }
 0x1f0   :  { %v289_v1 = vsel %vm288_vm3, %v589_v49, %v285_v61 }
 0x1f1   :  { %v291_v3 = vmul.f32 %v289_v1, %v267_v62 }
 0x1f3   :  { %v294_v7 = vmul.f32 %v292_v60, %v291_v3 }
 0x1f5   :  { %v297_v57 = vadd.f32 %v295_v6, %v294_v7 }
 0x1f7   :  { %v298_v9 = vpack.c.bf16 %v297_v57, %v296_v8 }
 0x1f9   :  { %372 = vmatmul.bf16.vlgmr.msra.gmra.mxu1 %v298_v9 }
 0x276   :  { %v373_v11 = vpop.f32.mrf.mxu1 }
 0x277   :  { %v753_v12 = vadd.f32 %v373_v11, %v315_v10 }
 0x279   :  { %v380_v13 = vmul.f32 0.70710677, %v753_v12 }
 0x27b   :  { %v382_v14 = vmul.f32 %v380_v13, %v380_v13 }
 0x27d   :  { %v383_v16 = vmin.f32 %v382_v14, 16.0 }
 0x27e   :  { %v375_v56 = vpop.f32.mrf.mxu1 }
 0x27f   :  { %v384_v17 = vmul.f32 2.1237322e-06, %v383_v16  ;;  %v395_v18 = vmul.f32 3.8918573e-05, %v383_v16  ;;  %v756_v19 = vadd.f32 %v375_v56, %v315_v10 }
 0x281   :  { %v385_v4 = vadd.f32 0.00028619796, %v384_v17  ;;  %v396_v0 = vadd.f32 0.001143296, %v395_v18  ;;  %v759_v21 = vmul.f32 0.70710677, %v756_v19 }
 0x283   :  { %v386_v63 = vmul.f32 %v385_v4, %v383_v16  ;;  %v397_v2 = vmul.f32 %v396_v0, %v383_v16  ;;  %v422_v22 = vmul.f32 %v759_v21, %v759_v21 }
 0x285   :  { %v398_v23 = vadd.f32 0.014752088, %v397_v2  ;;  %v387_v24 = vadd.f32 0.0036580483, %v386_v63  ;;  %v423_v25 = vmin.f32 %v422_v22, 16.0  ;;  %v378_v63 = vmul.f32 0.5, %v753_v12 }
 0x286   :  { %v466_v22 = vperm.slane %v691_v38, 7  ;;  %v379_v12 = vmul.f32 0.5, %v756_v19 }
 0x287   :  { %v399_v26 = vmul.f32 %v398_v23, %v383_v16  ;;  %v424_v27 = vmul.f32 2.1237322e-06, %v423_v25  ;;  %v435_v28 = vmul.f32 3.8918573e-05, %v423_v25  ;;  %v388_v30 = vmul.f32 %v387_v24, %v383_v16 }
 0x289   :  { %v400_v29 = vadd.f32 0.112945676, %v399_v26  ;;  %v425_v31 = vadd.f32 0.00028619796, %v424_v27  ;;  %v436_v32 = vadd.f32 0.001143296, %v435_v28 }
 0x28a   :  { %v389_v37 = vadd.f32 0.05243302, %v388_v30 }
 0x28b   :  { %v401_v33 = vmul.f32 %v400_v29, %v383_v16  ;;  %v426_v34 = vmul.f32 %v425_v31, %v423_v25  ;;  %v437_v35 = vmul.f32 %v436_v32, %v423_v25 }
 0x28c   :  { %v390_v44 = vmul.f32 %v389_v37, %v383_v16 }
 0x28d   :  { %v402_v36 = vadd.f32 0.4994258, %v401_v33  ;;  %v438_v39 = vadd.f32 0.014752088, %v437_v35  ;;  %v427_v41 = vadd.f32 0.0036580483, %v426_v34 }
 0x28e   :  { %v391_v48 = vadd.f32 0.18741608, %v390_v44 }
 0x28f   :  { %v403_v40 = vmul.f32 %v402_v36, %v383_v16  ;;  %v439_v42 = vmul.f32 %v438_v39, %v423_v25  ;;  %v428_v46 = vmul.f32 %v427_v41, %v423_v25 }
 0x290   :  { %v392_v53 = vmul.f32 %v391_v48, %v383_v16 }
 0x291   :  { %v404_v43 = vadd.f32 1.0, %v403_v40  ;;  %v440_v45 = vadd.f32 0.112945676, %v439_v42  ;;  %v429_v50 = vadd.f32 0.05243302, %v428_v46 }
 0x292   :  { %v393_v61 = vadd.f32 1.1283791, %v392_v53 }
 0x293   :  { %590 = vrcp.f32 %v404_v43  ;;  %v441_v47 = vmul.f32 %v440_v45, %v423_v25  ;;  %v430_v58 = vmul.f32 %v429_v50, %v423_v25  ;;  %v416_v60 = vand.u32 2147483648, %v404_v43 }
 0x294   :  { %v414_v1 = vand.u32 2147483647, %v404_v43  ;;  %vm410_vm5 = vweird.f32 %v404_v43  ;;  %v394_v8 = vmul.f32 %v393_v61, %v380_v13 }
 0x295   :  { %v442_v49 = vadd.f32 0.4994258, %v441_v47  ;;  %v431_v3 = vadd.f32 0.18741608, %v430_v58  ;;  %v417_v6 = vor.u32 1.1754944e-38, %v416_v60 }
 0x296   :  { %vm415_vm7 = vcmp.eq.f32.partialorder %v414_v1, 8.507059e+37 }
 0x297   :  { %v443_v51 = vmul.f32 %v442_v49, %v423_v25  ;;  %v432_v10 = vmul.f32 %v431_v3, %v423_v25 }
 0x299   :  { %v591_v52 = vpop.eup %590  ;;  %v444_v55 = vadd.f32 1.0, %v443_v51  ;;  %v433_v18 = vadd.f32 1.1283791, %v432_v10 }
 0x29a   :  { %v406_v54 = vmul.f32 %v591_v52, %v404_v43  ;;  %vm411_vm4 = vweird.f32 %v591_v52 }
 0x29b   :  { %592 = vrcp.f32 %v444_v55  ;;  %vm412_vm6 = vmor %vm410_vm5, %vm411_vm4  ;;  %v456_v17 = vand.u32 2147483648, %v444_v55  ;;  %v454_v0 = vand.u32 2147483647, %v444_v55  ;;  %vm450_vm9 = vweird.f32 %v444_v55 }
 0x29c   :  { %v407_v59 = vsub.f32 1.0, %v406_v54  ;;  %v434_v25 = vmul.f32 %v433_v18, %v759_v21 }
 0x29d   :  { %v457_v24 = vor.u32 1.1754944e-38, %v456_v17  ;;  %vm455_vm11 = vcmp.eq.f32.partialorder %v454_v0, 8.507059e+37 }
 0x29e   :  { %v408_v62 = vmul.f32 %v591_v52, %v407_v59 }
 0x2a0   :  { %v409_v5 = vadd.f32 %v591_v52, %v408_v62 }
 0x2a1   :  { %v593_v7 = vpop.eup %592 }
 0x2a2   :  { %v413_v57 = vsel %vm412_vm6, %v591_v52, %v409_v5  ;;  %v446_v11 = vmul.f32 %v593_v7, %v444_v55  ;;  %vm451_vm8 = vweird.f32 %v593_v7 }
 0x2a3   :  { %v418_v9 = vsel %vm415_vm7, %v417_v6, %v413_v57  ;;  %vm452_vm10 = vmor %vm450_vm9, %vm451_vm8 }
 0x2a4   :  { %v419_v14 = vmul.f32 %v418_v9, %v394_v8  ;;  %v447_v16 = vsub.f32 1.0, %v446_v11 }
 0x2a6   :  { %v557_v56 = vclamps-f32 %v419_v14, 1.0  ;;  %v448_v4 = vmul.f32 %v593_v7, %v447_v16 }
 0x2a8   :  { %v462_v2 = vadd.f32 1.0, %v557_v56  ;;  %v449_v23 = vadd.f32 %v593_v7, %v448_v4 }
 0x2aa   :  { %v464_v13 = vmul.f32 %v462_v2, %v378_v63  ;;  %v453_v26 = vsel %vm452_vm10, %v593_v7, %v449_v23 }
 0x2ab   :  { %v458_v28 = vsel %vm455_vm11, %v457_v24, %v453_v26 }
 0x2ac   :  { %v467_v27 = vmul.f32 %v466_v22, %v464_v13  ;;  %v459_v29 = vmul.f32 %v458_v28, %v434_v25 }
 0x2ae   :  { %v469_v30 = vadd.f32 %v467_v27, %v712_v15  ;;  %v558_v31 = vclamps-f32 %v459_v29, 1.0 }
 0x2b0   :  { %471 = vst [vmem:[#allocation2] sm:$0xff] %v469_v30  ;;  %v463_v32 = vadd.f32 1.0, %v558_v31 }
 0x2b2   :  { %v465_v38 = vmul.f32 %v463_v32, %v379_v12 }
 0x2b4   :  { %v468_v21 = vmul.f32 %v466_v22, %v465_v38 }
 0x2b6   :  { %v470_v33 = vadd.f32 %v468_v21, %v719_v20 }
 0x2b8   :  { %472 = vst [vmem:[#allocation2 + $0x8] sm:$0xff] %v470_v33 }
 0x2b9   :  { %485 = dma.vmem_to_hbm [thread:$0]  %s478_s24, 256, %s480_s26, [#allocation3], %s621_s27, %s621_s27, %s622_s28  }
 0x2ba   :  { %618 = dma.done.wait [#allocation3], 256  }
 0x2bb   :  { %619 = vsyncadd [#allocation3], 4294967040 }
 0x2bc   :  { %490 = vsyncpa [#allocation3], 1 }

</bundles_post_ra>
